<compile_context>
chip_gen: v7x
topology: tpu7x:2x2x1
jax: 0.10.0
libtpu: 0.0.40
codegen_flags: <defaults>
</compile_context>

<pallas_src>
import functools

import jax
import jax.numpy as jnp
from jax.experimental import pallas as pl
from jax.experimental.pallas import tpu as pltpu

LANE = 128
SUBLANE = 8


def _round_up(x, m):
    return ((x + m - 1) // m) * m


def _policy_kernel(x_ref, w1_ref, b1_ref, w2_ref, b2_ref, w3_ref, b3_ref, o_ref):
    # Layer 1: bf16 matmul on the MXU, f32 accumulation; bias + ReLU in f32.
    x = x_ref[...].astype(jnp.bfloat16)
    h = jnp.dot(x, w1_ref[...], preferred_element_type=jnp.float32)
    h = jnp.maximum(h + b1_ref[...], 0.0)
    # Layer 2.
    h = jnp.dot(h.astype(jnp.bfloat16), w2_ref[...], preferred_element_type=jnp.float32)
    h = jnp.maximum(h + b2_ref[...], 0.0)
    # Output layer: linear + tanh (tanh runs on the EUP slot).
    out = jnp.dot(h.astype(jnp.bfloat16), w3_ref[...], preferred_element_type=jnp.float32)
    o_ref[...] = jnp.tanh(out + b3_ref[...]).astype(o_ref.dtype)


def prepare_params(params):
    """One-time param prep: pad hidden/output dims to multiples of 128 (lane-dense),
    cast matmul weights to bf16, keep biases in f32. Padded columns are exactly zero,
    so slicing the kernel output back to action_dim is exact."""
    w1, b1, w2, b2, w3, b3 = params
    s_dim, h1 = w1.shape
    _, h2 = w2.shape
    _, a_dim = w3.shape
    h1p, h2p, ap = _round_up(h1, LANE), _round_up(h2, LANE), _round_up(a_dim, LANE)

    def pad2(a, r, c):
        return jnp.pad(a, ((0, r - a.shape[0]), (0, c - a.shape[1])))

    padded = (
        pad2(w1, s_dim, h1p).astype(jnp.bfloat16),
        pad2(b1, 1, h1p).astype(jnp.float32),
        pad2(w2, h1p, h2p).astype(jnp.bfloat16),
        pad2(b2, 1, h2p).astype(jnp.float32),
        pad2(w3, h2p, ap).astype(jnp.bfloat16),
        pad2(b3, 1, ap).astype(jnp.float32),
    )
    return padded, a_dim


@functools.partial(jax.jit, static_argnames=("action_dim", "block_rows"))
def deterministic_policy_forward(states, padded_params, *, action_dim, block_rows=512):
    """states: [B, state_dim] f32 -> actions: [B, action_dim] f32 in (-1, 1)."""
    w1, b1, w2, b2, w3, b3 = padded_params
    batch, s_dim = states.shape
    ap = w3.shape[1]

    # Batch tile: big enough to hit the HBM-streaming roofline, small enough that
    # tiles + resident weights + f32 intermediates fit the v7x scoped-VMEM budget.
    tb = min(block_rows, _round_up(batch, SUBLANE))
    bp = _round_up(batch, tb)
    x = states if bp == batch else jnp.pad(states, ((0, bp - batch), (0, 0)))

    def resident(shape):
        # Full-array block, grid-invariant index -> DMA'd once, stays in VMEM.
        return pl.BlockSpec(shape, lambda i: (0, 0))

    out = pl.pallas_call(
        _policy_kernel,
        out_shape=jax.ShapeDtypeStruct((bp, ap), jnp.float32),
        grid=(bp // tb,),
        in_specs=[
            pl.BlockSpec((tb, s_dim), lambda i: (i, 0)),   # streamed batch tile
            resident(w1.shape), resident(b1.shape),
            resident(w2.shape), resident(b2.shape),
            resident(w3.shape), resident(b3.shape),
        ],
        out_specs=pl.BlockSpec((tb, ap), lambda i: (i, 0)),
        compiler_params=pltpu.CompilerParams(
            dimension_semantics=("parallel",),  # shard batch tiles across v7x's 2 TCs
        ),
    )(x, w1, b1, w2, b2, w3, b3)
    return out[:batch, :action_dim]


# ---------------------------------------------------------------------------
# Init + references (stand-ins for MLP + initialize_weight + torch forward).
# ---------------------------------------------------------------------------
def init_params(key, state_dim, action_dim, hidden_units=(256, 256)):
    dims = (state_dim,) + tuple(hidden_units) + (action_dim,)
    params = []
    for i in range(len(dims) - 1):
        key, wk = jax.random.split(key)
        w = jax.random.normal(wk, (dims[i], dims[i + 1]), jnp.float32) / jnp.sqrt(
            jnp.float32(dims[i])
        )
        b = jnp.zeros((1, dims[i + 1]), jnp.float32)
        params.extend([w, b])
    return tuple(params)


def reference_forward_f32(states, params):
    w1, b1, w2, b2, w3, b3 = params
    h = jnp.maximum(states @ w1 + b1, 0.0)
    h = jnp.maximum(h @ w2 + b2, 0.0)
    return jnp.tanh(h @ w3 + b3)


def reference_forward_bf16(states, padded_params, action_dim):
    """Same algorithm as the kernel (bf16 operands, f32 accumulation), pure XLA."""
    w1, b1, w2, b2, w3, b3 = padded_params
    h = jnp.dot(states.astype(jnp.bfloat16), w1, preferred_element_type=jnp.float32)
    h = jnp.maximum(h + b1, 0.0)
    h = jnp.dot(h.astype(jnp.bfloat16), w2, preferred_element_type=jnp.float32)
    h = jnp.maximum(h + b2, 0.0)
    out = jnp.dot(h.astype(jnp.bfloat16), w3, preferred_element_type=jnp.float32)
    return jnp.tanh(out + b3)[:, :action_dim]


# TODO(synk): exploit()/explore() are host-side numpy wrappers (reshape, gaussian
# noise, clip) around this forward; they are not kernel work and are left out.

if __name__ == "__main__":
    key = jax.random.PRNGKey(0)
    k_x, k_p = jax.random.split(key)

    batch, state_dim, action_dim = 8, 16, 4
    hidden_units = (32, 32)  # small stand-in for the default (256, 256)

    states = jax.random.normal(k_x, (batch, state_dim), jnp.float32)
    params = init_params(k_p, state_dim, action_dim, hidden_units)
    padded_params, a_dim = prepare_params(params)

    actions = deterministic_policy_forward(states, padded_params, action_dim=a_dim)
    actions = jax.block_until_ready(actions)

    assert actions.shape == (batch, action_dim)
    # Tight check against a reference with identical dtypes (bf16 MXU, f32 accum).
    ref_bf16 = reference_forward_bf16(states, padded_params, a_dim)
    assert jnp.allclose(actions, ref_bf16, atol=1e-2, rtol=1e-2)
    # Semantic check against the pure-f32 PyTorch-equivalent forward.
    ref_f32 = reference_forward_f32(states, params)
    assert jnp.allclose(actions, ref_f32, atol=5e-2, rtol=5e-2)
    assert bool(jnp.all(jnp.abs(actions) <= 1.0))

    print("KERNEL_OK")
</pallas_src>

<mosaic_0001>
module attributes {stable_mosaic.version = 11 : i64} {
  func.func @_policy_kernel(%arg0: i32, %arg1: memref<8x16xf32, #tpu.memory_space<vmem>>, %arg2: memref<16x128xbf16, #tpu.memory_space<vmem>>, %arg3: memref<1x128xf32, #tpu.memory_space<vmem>>, %arg4: memref<128x128xbf16, #tpu.memory_space<vmem>>, %arg5: memref<1x128xf32, #tpu.memory_space<vmem>>, %arg6: memref<128x128xbf16, #tpu.memory_space<vmem>>, %arg7: memref<1x128xf32, #tpu.memory_space<vmem>>, %arg8: memref<8x128xf32, #tpu.memory_space<vmem>>) attributes {dimension_semantics = [#tpu.dimension_semantics<parallel>], iteration_bounds = array<i64: 1>, scalar_prefetch = 0 : i64, scratch_operands = 0 : i64, tpu.core_type = #tpu.core_type<tc>, window_params = [{transform_indices = @transform_0, window_bounds = array<i64: 8, 16>}, {pipeline_mode = #tpu.pipeline_mode<synchronous>, transform_indices = @transform_1, window_bounds = array<i64: 16, 128>}, {pipeline_mode = #tpu.pipeline_mode<synchronous>, transform_indices = @transform_2, window_bounds = array<i64: 1, 128>}, {pipeline_mode = #tpu.pipeline_mode<synchronous>, transform_indices = @transform_3, window_bounds = array<i64: 128, 128>}, {pipeline_mode = #tpu.pipeline_mode<synchronous>, transform_indices = @transform_4, window_bounds = array<i64: 1, 128>}, {pipeline_mode = #tpu.pipeline_mode<synchronous>, transform_indices = @transform_5, window_bounds = array<i64: 128, 128>}, {pipeline_mode = #tpu.pipeline_mode<synchronous>, transform_indices = @transform_6, window_bounds = array<i64: 1, 128>}, {transform_indices = @transform_7, window_bounds = array<i64: 8, 128>}]} {
    %c0 = arith.constant 0 : index
    %c0_0 = arith.constant 0 : index
    %0 = vector.load %arg1[%c0, %c0_0] : memref<8x16xf32, #tpu.memory_space<vmem>>, vector<8x16xf32>
    %1 = arith.truncf %0 : vector<8x16xf32> to vector<8x16xbf16>
    %c0_1 = arith.constant 0 : index
    %c0_2 = arith.constant 0 : index
    %2 = vector.load %arg2[%c0_1, %c0_2] : memref<16x128xbf16, #tpu.memory_space<vmem>>, vector<16x128xbf16>
    %cst = arith.constant dense<0.000000e+00> : vector<8x128xf32>
    %3 = tpu.matmul %1, %2, %cst {dimension_numbers = #tpu.dot_dimension_numbers<[1], [0], [0], [1], [0, 0, 1, 1], [], []>} : vector<8x16xbf16>, vector<16x128xbf16>, vector<8x128xf32> -> vector<8x128xf32>
    %c0_3 = arith.constant 0 : index
    %c0_4 = arith.constant 0 : index
    %4 = vector.load %arg3[%c0_3, %c0_4] : memref<1x128xf32, #tpu.memory_space<vmem>>, vector<1x128xf32>
    %5 = vector.broadcast %4 : vector<1x128xf32> to vector<8x128xf32>
    %6 = arith.addf %3, %5 : vector<8x128xf32>
    %cst_5 = arith.constant 0.000000e+00 : f32
    %7 = vector.broadcast %cst_5 : f32 to vector<8x128xf32>
    %8 = arith.maximumf %6, %7 : vector<8x128xf32>
    %9 = arith.truncf %8 : vector<8x128xf32> to vector<8x128xbf16>
    %c0_6 = arith.constant 0 : index
    %c0_7 = arith.constant 0 : index
    %10 = vector.load %arg4[%c0_6, %c0_7] : memref<128x128xbf16, #tpu.memory_space<vmem>>, vector<128x128xbf16>
    %cst_8 = arith.constant dense<0.000000e+00> : vector<8x128xf32>
    %11 = tpu.matmul %9, %10, %cst_8 {dimension_numbers = #tpu.dot_dimension_numbers<[1], [0], [0], [1], [0, 0, 1, 1], [], []>} : vector<8x128xbf16>, vector<128x128xbf16>, vector<8x128xf32> -> vector<8x128xf32>
    %c0_9 = arith.constant 0 : index
    %c0_10 = arith.constant 0 : index
    %12 = vector.load %arg5[%c0_9, %c0_10] : memref<1x128xf32, #tpu.memory_space<vmem>>, vector<1x128xf32>
    %13 = vector.broadcast %12 : vector<1x128xf32> to vector<8x128xf32>
    %14 = arith.addf %11, %13 : vector<8x128xf32>
    %cst_11 = arith.constant 0.000000e+00 : f32
    %15 = vector.broadcast %cst_11 : f32 to vector<8x128xf32>
    %16 = arith.maximumf %14, %15 : vector<8x128xf32>
    %17 = arith.truncf %16 : vector<8x128xf32> to vector<8x128xbf16>
    %c0_12 = arith.constant 0 : index
    %c0_13 = arith.constant 0 : index
    %18 = vector.load %arg6[%c0_12, %c0_13] : memref<128x128xbf16, #tpu.memory_space<vmem>>, vector<128x128xbf16>
    %cst_14 = arith.constant dense<0.000000e+00> : vector<8x128xf32>
    %19 = tpu.matmul %17, %18, %cst_14 {dimension_numbers = #tpu.dot_dimension_numbers<[1], [0], [0], [1], [0, 0, 1, 1], [], []>} : vector<8x128xbf16>, vector<128x128xbf16>, vector<8x128xf32> -> vector<8x128xf32>
    %c0_15 = arith.constant 0 : index
    %c0_16 = arith.constant 0 : index
    %20 = vector.load %arg7[%c0_15, %c0_16] : memref<1x128xf32, #tpu.memory_space<vmem>>, vector<1x128xf32>
    %21 = vector.broadcast %20 : vector<1x128xf32> to vector<8x128xf32>
    %22 = arith.addf %19, %21 : vector<8x128xf32>
    %23 = math.tanh %22 : vector<8x128xf32>
    %c0_17 = arith.constant 0 : index
    %c0_18 = arith.constant 0 : index
    %24 = vector.load %arg8[%c0_17, %c0_18] : memref<8x128xf32, #tpu.memory_space<vmem>>, vector<8x128xf32>
    tpu.vector_store %arg8[%c0_17, %c0_18], %23 {strides = array<i32>} : memref<8x128xf32, #tpu.memory_space<vmem>>, vector<8x128xf32>,
    return
  }
  func.func @transform_0(%arg0: i32) -> (i32, i32) {
    %c0_i32 = arith.constant 0 : i32
    %c0_i32_0 = arith.constant 0 : i32
    return %arg0, %c0_i32 : i32, i32
  }
  func.func @transform_1(%arg0: i32) -> (i32, i32) {
    %c0_i32 = arith.constant 0 : i32
    %c0_i32_0 = arith.constant 0 : i32
    %c0_i32_1 = arith.constant 0 : i32
    return %c0_i32, %c0_i32_0 : i32, i32
  }
  func.func @transform_2(%arg0: i32) -> (i32, i32) {
    %c0_i32 = arith.constant 0 : i32
    %c0_i32_0 = arith.constant 0 : i32
    %c0_i32_1 = arith.constant 0 : i32
    return %c0_i32, %c0_i32_0 : i32, i32
  }
  func.func @transform_3(%arg0: i32) -> (i32, i32) {
    %c0_i32 = arith.constant 0 : i32
    %c0_i32_0 = arith.constant 0 : i32
    %c0_i32_1 = arith.constant 0 : i32
    return %c0_i32, %c0_i32_0 : i32, i32
  }
  func.func @transform_4(%arg0: i32) -> (i32, i32) {
    %c0_i32 = arith.constant 0 : i32
    %c0_i32_0 = arith.constant 0 : i32
    %c0_i32_1 = arith.constant 0 : i32
    return %c0_i32, %c0_i32_0 : i32, i32
  }
  func.func @transform_5(%arg0: i32) -> (i32, i32) {
    %c0_i32 = arith.constant 0 : i32
    %c0_i32_0 = arith.constant 0 : i32
    %c0_i32_1 = arith.constant 0 : i32
    return %c0_i32, %c0_i32_0 : i32, i32
  }
  func.func @transform_6(%arg0: i32) -> (i32, i32) {
    %c0_i32 = arith.constant 0 : i32
    %c0_i32_0 = arith.constant 0 : i32
    %c0_i32_1 = arith.constant 0 : i32
    return %c0_i32, %c0_i32_0 : i32, i32
  }
  func.func @transform_7(%arg0: i32) -> (i32, i32) {
    %c0_i32 = arith.constant 0 : i32
    %c0_i32_0 = arith.constant 0 : i32
    return %arg0, %c0_i32 : i32, i32
  }
}

</mosaic_0001>

<bundles_post_ra>
// kernel: deterministic_policy_forward.1
= control target key start
LH: loop header
LB: loop body
LE: loop exit
PB: predicated region body
PF: predicated region fallthrough
CT: control target
= control target key end

     0   :  { %12 = vsyncpa [#allocation3], 0  ;;  %s721_s0 = inlined_call_operand.hbm [shape: f32[8,16], index: 0, kind: input, shape index: {}]   ;;  %s722_s1 = inlined_call_operand.hbm [shape: bf16[16,128], index: 1, kind: input, shape index: {}]   ;;  %s723_s2 = inlined_call_operand.vmem [shape: f32[1,128], index: 2, kind: input, shape index: {}]   ;;  %s724_s3 = inlined_call_operand.hbm [shape: bf16[128,128], index: 3, kind: input, shape index: {}]   ;;  %s725_s4 = inlined_call_operand.vmem [shape: f32[1,128], index: 4, kind: input, shape index: {}]   ;;  %s726_s5 = inlined_call_operand.hbm [shape: bf16[128,128], index: 5, kind: input, shape index: {}]   ;;  %s727_s6 = inlined_call_operand.vmem [shape: f32[1,128], index: 6, kind: input, shape index: {}]   ;;  %s728_s7 = inlined_call_operand.vmem [shape: f32[8,128], index: 7, kind: output, shape index: {}]  }
   0x1   :  { %13 = vsyncpa [#allocation5], 0 }
   0x2   :  { %14 = vsyncpa [#allocation8], 0  ;;  %s584_s24 = smov [#allocation4]   ;;  %s490_s28 = scalar_lea.hbm %s722_s1, 128 }
   0x3   :  { %s30_s25 = sshll.u32 %s584_s24, 4  ;;  %p491_p0 = scmp.ne.s32.totalorder %s722_s1, %s490_s28  ;;  %s31_s25 = int_to_ptr.vmem [resolvable:$true] %s30_s25 }
   0x4   :  { %p494_p1 = scmp.lt.u32.totalorder %s490_s28, %s722_s1 }
   0x6   :  { %p496_p2 = pnand %p494_p1, %p491_p0 }
   0x8   :  { %499 = shalt.err (!%p496_p2)
}
   0x9   :  { %s500_s10 = scalar_lea.vmem %s31_s25, 128  ;;  %p505_p4 = scmp.lt.s32.totalorder %s31_s25, %s31_s25 }
   0xa   :  { %p501_p3 = scmp.ne.s32.totalorder %s31_s25, %s500_s10  ;;  %p506_p5 = scmp.lt.s32.totalorder %s500_s10, %s500_s10 }
   0xc   :  { %p507_p6 = por %p506_p5, %p505_p4 }
   0xe   :  { %p508_p7 = pnand %p507_p6, %p501_p3 }
  0x10   :  { %511 = shalt.err (!%p508_p7)
}
  0x11   :  { %s585_s11 = smov 64   ;;  %s586_s12 = smov 4  }
  0x12   :  { %36 = dma.hbm_to_vmem [thread:$0]  %s722_s1, 128, %s31_s25, [#allocation5], %s585_s11, %s585_s11, %s586_s12  }
  0x13   :  { %s587_s15 = smov [#allocation2]   ;;  %s588_s17 = smov [#allocation6]  }
  0x14   :  { %s21_s16 = sshll.u32 %s587_s15, 4  ;;  %s44_s18 = sshll.u32 %s588_s17, 4  ;;  %s22_s16 = int_to_ptr.vmem [resolvable:$true] %s21_s16  ;;  %s45_s18 = int_to_ptr.vmem [resolvable:$true] %s44_s18 }
  0x15   :  { %s512_s21 = scalar_lea.hbm %s721_s0, 128 }
  0x16   :  { %p513_p8 = scmp.ne.s32.totalorder %s721_s0, %s512_s21  ;;  %p516_p9 = scmp.lt.u32.totalorder %s512_s21, %s721_s0 }
  0x18   :  { %p518_p10 = pnand %p516_p9, %p513_p8 }
  0x1a   :  { %521 = shalt.err (!%p518_p10)
}
  0x1b   :  { %s522_s1 = scalar_lea.vmem %s22_s16, 128  ;;  %p527_p12 = scmp.lt.s32.totalorder %s22_s16, %s22_s16 }
  0x1c   :  { %p523_p11 = scmp.ne.s32.totalorder %s22_s16, %s522_s1  ;;  %p528_p13 = scmp.lt.s32.totalorder %s522_s1, %s522_s1 }
  0x1e   :  { %p529_p0 = por %p528_p13, %p527_p12 }
  0x20   :  { %p530_p1 = pnand %p529_p0, %p523_p11 }
  0x22   :  { %533 = shalt.err (!%p530_p1)
}
  0x23   :  { %24 = dma.hbm_to_vmem [thread:$0]  %s721_s0, 128, %s22_s16, [#allocation3]  }
  0x24   :  { %s534_s30 = scalar_lea.hbm %s724_s3, 1024 }
  0x25   :  { %p535_p2 = scmp.ne.s32.totalorder %s724_s3, %s534_s30  ;;  %p538_p3 = scmp.lt.u32.totalorder %s534_s30, %s724_s3 }
  0x27   :  { %p540_p4 = pnand %p538_p3, %p535_p2 }
  0x29   :  { %543 = shalt.err (!%p540_p4)
}
  0x2a   :  { %s544_s14 = scalar_lea.vmem %s45_s18, 1024  ;;  %p549_p6 = scmp.lt.s32.totalorder %s45_s18, %s45_s18 }
  0x2b   :  { %p545_p5 = scmp.ne.s32.totalorder %s45_s18, %s544_s14  ;;  %p550_p7 = scmp.lt.s32.totalorder %s544_s14, %s544_s14 }
  0x2d   :  { %p551_p8 = por %p550_p7, %p549_p6 }
  0x2f   :  { %p552_p9 = pnand %p551_p8, %p545_p5 }
  0x31   :  { %555 = shalt.err (!%p552_p9)
}
  0x32   :  { %50 = dma.hbm_to_vmem [thread:$0]  %s724_s3, 1024, %s45_s18, [#allocation5], %s585_s11, %s585_s11, %s586_s12  }
  0x33   :  { %s589_s16 = smov [#allocation7]   ;;  %s556_s21 = scalar_lea.hbm %s726_s5, 1024 }
  0x34   :  { %s58_s17 = sshll.u32 %s589_s16, 4  ;;  %p557_p10 = scmp.ne.s32.totalorder %s726_s5, %s556_s21  ;;  %s59_s17 = int_to_ptr.vmem [resolvable:$true] %s58_s17 }
  0x35   :  { %p560_p11 = scmp.lt.u32.totalorder %s556_s21, %s726_s5 }
  0x37   :  { %p562_p12 = pnand %p560_p11, %p557_p10 }
  0x39   :  { %565 = shalt.err (!%p562_p12)
}
  0x3a   :  { %s566_s1 = scalar_lea.vmem %s59_s17, 1024  ;;  %p571_p0 = scmp.lt.s32.totalorder %s59_s17, %s59_s17 }
  0x3b   :  { %p567_p13 = scmp.ne.s32.totalorder %s59_s17, %s566_s1  ;;  %p572_p1 = scmp.lt.s32.totalorder %s566_s1, %s566_s1 }
  0x3d   :  { %p573_p2 = por %p572_p1, %p571_p0 }
  0x3f   :  { %p574_p3 = pnand %p573_p2, %p567_p13 }
  0x41   :  { %577 = shalt.err (!%p574_p3)
}
  0x42   :  { %64 = dma.hbm_to_vmem [thread:$0]  %s726_s5, 1024, %s59_s17, [#allocation8], %s585_s11, %s585_s11, %s586_s12  }
  0x43   :  { %578 = dma.done.wait [#allocation3], 128  }
  0x44   :  { %579 = vsyncadd [#allocation3], 4294967168 }
  0x45   :  { %580 = dma.done.wait [#allocation5], 1152  }
  0x46   :  { %581 = vsyncadd [#allocation5], 4294966144 }
  0x47   :  { %582 = dma.done.wait [#allocation8], 1024  }
  0x48   :  { %583 = vsyncadd [#allocation8], 4294966272  ;;  %v590_v0 = vmov 0.0   ;;  %vm591_vm0 = vmmov 0   ;;  %v471_v1 = vld [vmem:[#allocation4] sm:$0xff]   ;;  %v80_v2 = vld [vmem:[#allocation2] sm:$0xff] }
  0x49   :  { %417 = vmatprep.subr.bf16.mxu0 %v590_v0  ;;  %419 = vmatprep.mubr.msk.bf16.mxu0 %vm591_vm0, %v590_v0  ;;  %v81_v3 = vpack.c.bf16 %v80_v2, %v80_v2  ;;  %vm97_vm1 = vcmask 130048   ;;  %v472_v4 = vld [vmem:[#allocation6] sm:$0xff]   ;;  %v473_v5 = vld [vmem:[#allocation6 + $0x8] sm:$0xff]   ;;  %v474_v6 = vld [vmem:[#allocation6 + $0x10] sm:$0xff]  }
  0x4a   :  { %423 = vmatprep.subr.bf16.mxu1 %v590_v0  ;;  %439 = vmatprep.mubr.msk.bf16.mxu1 %vm591_vm0, %v590_v0  ;;  %v475_v7 = vld [vmem:[#allocation6 + $0x18] sm:$0xff]   ;;  %v476_v8 = vld [vmem:[#allocation6 + $0x20] sm:$0xff]   ;;  %v477_v9 = vld [vmem:[#allocation6 + $0x28] sm:$0xff]  }
  0x4b   :  { %418 = vmatpush3.bf16.msra.mxu0 %v471_v1  ;;  %424 = vmatpush3.bf16.msra.mxu1 %v472_v4  ;;  %v478_v10 = vld [vmem:[#allocation6 + $0x30] sm:$0xff]   ;;  %v479_v11 = vld [vmem:[#allocation6 + $0x38] sm:$0xff]   ;;  %v480_v12 = vld [vmem:[#allocation7] sm:$0xff]  }
  0x4c   :  { %443 = vmatprep.subr.bf16.mxu0 %v590_v0  ;;  %425 = vmatprep.subr.bf16.mxu1 %v590_v0  ;;  %v481_v13 = vld [vmem:[#allocation7 + $0x8] sm:$0xff]   ;;  %v482_v14 = vld [vmem:[#allocation7 + $0x10] sm:$0xff]   ;;  %v483_v15 = vld [vmem:[#allocation7 + $0x18] sm:$0xff]  }
  0x4d   :  { %v484_v16 = vld [vmem:[#allocation7 + $0x20] sm:$0xff]   ;;  %v485_v17 = vld [vmem:[#allocation7 + $0x28] sm:$0xff]   ;;  %v376_v18 = vld [vmem:[%s723_s2] ss:$0 sm:$0xff] }
  0x4e   :  { %420 = vmatmul.mubr.msk.bf16.vlgmr.msra.gmra.mrb[0].mxu0 %vm97_vm1, %v81_v3  ;;  %v486_v26 = vld [vmem:[#allocation7 + $0x30] sm:$0xff]   ;;  %v487_v27 = vld [vmem:[#allocation7 + $0x38] sm:$0xff]  }
  0x4f   :  { %459 = vmatprep.mubr.msk.bf16.mxu0 %vm591_vm0, %v590_v0  ;;  %426 = vmatpush3.bf16.msra.mxu1 %v473_v5  ;;  %v379_v28 = vld [vmem:[%s725_s4] ss:$0 sm:$0xff] }
  0x50   :  { %427 = vmatprep.subr.bf16.mxu1 %v590_v0  ;;  %444 = vmatpush3.bf16.msra.mxu0 %v480_v12  ;;  %v388_v36 = vld [vmem:[%s727_s6] ss:$0 sm:$0xff] }
  0x51   :  { %445 = vmatprep.subr.bf16.mxu0 %v590_v0 }
  0x53   :  { %428 = vmatpush3.bf16.msra.mxu1 %v474_v6 }
  0x54   :  { %429 = vmatprep.subr.bf16.mxu1 %v590_v0  ;;  %446 = vmatpush3.bf16.msra.mxu0 %v481_v13 }
  0x55   :  { %447 = vmatprep.subr.bf16.mxu0 %v590_v0 }
  0x57   :  { %430 = vmatpush3.bf16.msra.mxu1 %v475_v7 }
  0x58   :  { %431 = vmatprep.subr.bf16.mxu1 %v590_v0  ;;  %448 = vmatpush3.bf16.msra.mxu0 %v482_v14 }
  0x59   :  { %449 = vmatprep.subr.bf16.mxu0 %v590_v0 }
  0x5b   :  { %432 = vmatpush3.bf16.msra.mxu1 %v476_v8 }
  0x5c   :  { %433 = vmatprep.subr.bf16.mxu1 %v590_v0  ;;  %450 = vmatpush3.bf16.msra.mxu0 %v483_v15 }
  0x5d   :  { %451 = vmatprep.subr.bf16.mxu0 %v590_v0 }
  0x5f   :  { %434 = vmatpush3.bf16.msra.mxu1 %v477_v9 }
  0x60   :  { %435 = vmatprep.subr.bf16.mxu1 %v590_v0  ;;  %452 = vmatpush3.bf16.msra.mxu0 %v484_v16 }
  0x61   :  { %453 = vmatprep.subr.bf16.mxu0 %v590_v0 }
  0x63   :  { %436 = vmatpush3.bf16.msra.mxu1 %v478_v10 }
  0x64   :  { %437 = vmatprep.subr.bf16.mxu1 %v590_v0  ;;  %454 = vmatpush3.bf16.msra.mxu0 %v485_v17 }
  0x65   :  { %455 = vmatprep.subr.bf16.mxu0 %v590_v0 }
  0x67   :  { %438 = vmatpush3.bf16.msra.mxu1 %v479_v11 }
  0x68   :  { %456 = vmatpush3.bf16.msra.mxu0 %v486_v26 }
  0x69   :  { %457 = vmatprep.subr.bf16.mxu0 %v590_v0 }
  0x6c   :  { %458 = vmatpush3.bf16.msra.mxu0 %v487_v27 }
 0x121   :  { %v135_v19 = vpop.f32.mrb[0].mxu0 }
 0x122   :  { %v136_v20 = vadd.f32 %v376_v18, %v135_v19  ;;  %v421_v21 = vpop.f32.mrb[1].mxu0 }
 0x123   :  { %v138_v22 = vpop.f32.mrb[2].mxu0 }
 0x124   :  { %v141_v23 = vmax.f32 %v136_v20, 0.0  ;;  %v422_v24 = vpop.f32.mrb[3].mxu0 }
 0x126   :  { %v142_v25 = vpack.c.bf16 %v141_v23, %v141_v23 }
 0x128   :  { %440 = vmatmul.mubr.bf16.vlgmr.msra.gmra.mrb[0].mxu1 %v142_v25 }
 0x1fb   :  { %v248_v29 = vpop.f32.mrb[0].mxu1 }
 0x1fc   :  { %v249_v30 = vadd.f32 %v379_v28, %v248_v29  ;;  %v441_v31 = vpop.f32.mrb[1].mxu1 }
 0x1fd   :  { %v251_v32 = vpop.f32.mrb[2].mxu1 }
 0x1fe   :  { %v254_v33 = vmax.f32 %v249_v30, 0.0  ;;  %v442_v34 = vpop.f32.mrb[3].mxu1 }
 0x200   :  { %v255_v35 = vpack.c.bf16 %v254_v33, %v254_v33 }
 0x202   :  { %460 = vmatmul.mubr.bf16.vlgmr.msra.gmra.mrb[4].mxu0 %v255_v35 }
 0x2d5   :  { %v361_v37 = vpop.f32.mrb[4].mxu0 }
 0x2d6   :  { %v362_v38 = vadd.f32 %v388_v36, %v361_v37  ;;  %v461_v39 = vpop.f32.mrb[5].mxu0 }
 0x2d7   :  { %v364_v40 = vpop.f32.mrb[6].mxu0 }
 0x2d8   :  { %488 = vtanh.f32 %v362_v38  ;;  %v462_v41 = vpop.f32.mrb[7].mxu0 }
 0x2e2   :  { %v489_v42 = vpop.eup %488 }
 0x2e3   :  { %368 = vst [vmem:[%s728_s7] sm:$0xff] %v489_v42 }
 0x2e4   :  { %373 = vsyncpa [#allocation3], 1 }
 0x2e5   :  { %374 = vsyncpa [#allocation5], 1 }
 0x2e6   :  { %375 = vsyncpa [#allocation8], 1 }

</bundles_post_ra>
